<compile_context>
chip_gen: v7x
topology: tpu7x:2x2x1
jax: 0.10.0
libtpu: 0.0.40
codegen_flags: <defaults>
</compile_context>

<pallas_src>
import jax
import jax.numpy as jnp
from jax.experimental import pallas as pl
from jax.experimental.pallas import tpu as pltpu


# ----------------------------- kernels --------------------------------------

def _mul_add_kernel(x_ref, w_ref, b_ref, o_ref):
    # x_ref: (tm, tn); w_ref/b_ref: (1, tn) broadcast over sublanes (VPU only).
    o_ref[...] = x_ref[...] * w_ref[...] + b_ref[...]


def _mul_kernel(x_ref, w_ref, o_ref):
    o_ref[...] = x_ref[...] * w_ref[...]


def _add_kernel(x_ref, b_ref, o_ref):
    o_ref[...] = x_ref[...] + b_ref[...]


# ----------------------------- wrapper ---------------------------------------

def _round_up(x, m):
    return ((x + m - 1) // m) * m


def element_wise_linear(x, weight=None, bias=None, *,
                        target_block_bytes=1 << 20,   # ~1 MiB per x block
                        lane_target=512):
    """Pallas implementation of ElementWiseLinear.forward.

    x:      (..., size)
    weight: (size,) or None
    bias:   (size,) or None
    """
    # TODO(synk): PyTorch's inplace=True path mutates x; JAX arrays are
    # immutable, so the same math is returned as a new array.
    if weight is None and bias is None:
        return x

    orig_shape = x.shape
    size = orig_shape[-1]
    dtype = x.dtype
    itemsize = jnp.dtype(dtype).itemsize

    x2 = x.reshape(-1, size)
    N = x2.shape[0]

    # --- lane widening: fold k rows into one lane-dense row when size is small
    k = 1
    while (2 * k * size <= 4096) and (N % (2 * k) == 0) and (k * size < lane_target):
        k *= 2
    size_eff = k * size
    N_eff = N // k
    if k > 1:
        x2 = x2.reshape(N_eff, size_eff)

    def _prep(p):
        if p is None:
            return None
        p = p.astype(dtype).reshape(1, size)
        if k > 1:
            p = jnp.tile(p, (1, k))      # matches the row-folded layout of x2
        return p

    w = _prep(weight)
    b = _prep(bias)

    packing = 8 * max(1, 4 // itemsize)          # 8 (f32) / 16 (bf16) / 32 (int8)
    row_bytes = size_eff * itemsize

    if row_bytes <= target_block_bytes:
        # ---- 1-D grid over row tiles, full lane extent -----------------------
        tn = size_eff
        tm = max(packing, (target_block_bytes // row_bytes) // packing * packing)
        if tm >= N_eff:
            # Whole array fits in one block; split in two (if it stays aligned)
            # so v7x's second TensorCore gets work. Otherwise use full extent.
            half = N_eff // 2
            if N_eff % 2 == 0 and half % packing == 0 and half > 0:
                tm = half
            else:
                tm = N_eff
        grid = (pl.cdiv(N_eff, tm),)
        x_spec = pl.BlockSpec((tm, tn), lambda i: (i, 0))
        out_spec = pl.BlockSpec((tm, tn), lambda i: (i, 0))
        p_spec = pl.BlockSpec((1, tn), lambda i: (0, 0))       # resident
        dim_sem = ("parallel",)
    else:
        # ---- 2-D grid: trailing dim too wide for one block; tile lanes too ---
        tm = packing if N_eff >= packing else N_eff
        tn = max(128, (target_block_bytes // (max(tm, 1) * itemsize)) // 128 * 128)
        tn = min(tn, _round_up(size_eff, 128))
        # Lane axis OUTER, row axis INNER: param block index is constant across
        # the inner loop, so weight/bias stay resident per lane tile.
        grid = (pl.cdiv(size_eff, tn), pl.cdiv(N_eff, tm))
        x_spec = pl.BlockSpec((tm, tn), lambda j, i: (i, j))
        out_spec = pl.BlockSpec((tm, tn), lambda j, i: (i, j))
        p_spec = pl.BlockSpec((1, tn), lambda j, i: (0, j))
        dim_sem = ("parallel", "parallel")

    # --- VMEM budget: x + out double-buffered, plus resident params ----------
    block_bytes = tm * tn * itemsize
    n_params = int(w is not None) + int(b is not None)
    vmem_needed = 4 * block_bytes + 2 * n_params * tn * itemsize
    vmem_limit = int(min(max(2 * vmem_needed, 8 * 1024 * 1024), 48 * 1024 * 1024))

    if w is not None and b is not None:
        kernel = _mul_add_kernel
        params = (w, b)
        param_specs = [p_spec, p_spec]
    elif w is not None:
        kernel = _mul_kernel
        params = (w,)
        param_specs = [p_spec]
    else:
        kernel = _add_kernel
        params = (b,)
        param_specs = [p_spec]

    out = pl.pallas_call(
        kernel,
        out_shape=jax.ShapeDtypeStruct((N_eff, size_eff), dtype),
        grid_spec=pltpu.PrefetchScalarGridSpec(
            num_scalar_prefetch=0,
            grid=grid,
            in_specs=[x_spec] + param_specs,
            out_specs=out_spec,
        ),
        compiler_params=pltpu.CompilerParams(
            dimension_semantics=dim_sem,
            vmem_limit_bytes=vmem_limit,
        ),
    )(x2, *params)

    return out.reshape(orig_shape)


# ------------------------------- demo -----------------------------------------

if __name__ == "__main__":
    key = jax.random.PRNGKey(0)
    k1, k2, k3, k4, k5, k6 = jax.random.split(key, 6)

    # Small shapes consistent with the module: x is (N, size).
    N, size = 16, 128
    x = jax.random.normal(k1, (N, size), dtype=jnp.float32)

    # 1) Module-default parameters (reset_parameters): weight=ones, bias=zeros.
    w_default = jnp.ones((size,), jnp.float32)
    b_default = jnp.zeros((size,), jnp.float32)
    y = jax.block_until_ready(element_wise_linear(x, w_default, b_default))
    assert jnp.allclose(y, x * w_default + b_default, atol=1e-6), "default params mismatch"

    # 2) Non-trivial weight & bias (exercises the lane-widened resident params).
    w = jax.random.normal(k2, (size,), jnp.float32)
    b = jax.random.normal(k3, (size,), jnp.float32)
    y2 = jax.block_until_ready(element_wise_linear(x, w, b))
    assert jnp.allclose(y2, x * w + b, atol=1e-5), "weight+bias mismatch"

    # 3) weight-only / bias-only specializations.
    y3 = jax.block_until_ready(element_wise_linear(x, w, None))
    assert jnp.allclose(y3, x * w, atol=1e-5), "weight-only mismatch"
    y4 = jax.block_until_ready(element_wise_linear(x, None, b))
    assert jnp.allclose(y4, x + b, atol=1e-5), "bias-only mismatch"

    # 4) both-None case: identity, no kernel launched.
    y5 = element_wise_linear(x, None, None)
    assert y5 is x

    # 5) bf16 with a small trailing dim: exercises lane widening + 16-row packing.
    N2, size2 = 24, 64
    xb = jax.random.normal(k4, (N2, size2), dtype=jnp.bfloat16)
    wb_ = jnp.ones((size2,), jnp.bfloat16) * jnp.bfloat16(0.5)
    bb_ = jnp.ones((size2,), jnp.bfloat16) * jnp.bfloat16(0.25)
    y6 = jax.block_until_ready(element_wise_linear(xb, wb_, bb_))
    assert jnp.allclose(y6.astype(jnp.float32),
                        (xb * wb_ + bb_).astype(jnp.float32), atol=1e-2), "bf16 mismatch"

    # 6) Wide trailing dim + tiny block budget: exercises the 2-D lane-tiled grid.
    N3, size3 = 16, 2048
    xw = jax.random.normal(k5, (N3, size3), dtype=jnp.float32)
    ww = jax.random.normal(k6, (size3,), dtype=jnp.float32)
    bw = jnp.full((size3,), 0.5, jnp.float32)
    y7 = jax.block_until_ready(
        element_wise_linear(xw, ww, bw, target_block_bytes=4096))
    assert jnp.allclose(y7, xw * ww + bw, atol=1e-5), "lane-tiled path mismatch"

    # 7) >2-D input: leading dims are flattened, result reshaped back.
    x3 = jax.random.normal(k1, (2, 8, size), dtype=jnp.float32)
    y8 = jax.block_until_ready(element_wise_linear(x3, w, b))
    assert y8.shape == x3.shape
    assert jnp.allclose(y8, x3 * w + b, atol=1e-5), "3-D input mismatch"

    print("KERNEL_OK")
</pallas_src>

<mosaic_0001>
module attributes {stable_mosaic.version = 11 : i64} {
  func.func @_mul_add_kernel(%arg0: i32, %arg1: memref<4x512xf32, #tpu.memory_space<vmem>>, %arg2: memref<1x512xf32, #tpu.memory_space<vmem>>, %arg3: memref<1x512xf32, #tpu.memory_space<vmem>>, %arg4: memref<4x512xf32, #tpu.memory_space<vmem>>) attributes {dimension_semantics = [#tpu.dimension_semantics<parallel>], iteration_bounds = array<i64: 1>, scalar_prefetch = 0 : i64, scratch_operands = 0 : i64, tpu.core_type = #tpu.core_type<tc>, window_params = [{transform_indices = @transform_0, window_bounds = array<i64: 4, 512>}, {pipeline_mode = #tpu.pipeline_mode<synchronous>, transform_indices = @transform_1, window_bounds = array<i64: 1, 512>}, {pipeline_mode = #tpu.pipeline_mode<synchronous>, transform_indices = @transform_2, window_bounds = array<i64: 1, 512>}, {transform_indices = @transform_3, window_bounds = array<i64: 4, 512>}]} {
    %c0 = arith.constant 0 : index
    %c0_0 = arith.constant 0 : index
    %0 = vector.load %arg1[%c0, %c0_0] : memref<4x512xf32, #tpu.memory_space<vmem>>, vector<4x512xf32>
    %c0_1 = arith.constant 0 : index
    %c0_2 = arith.constant 0 : index
    %1 = vector.load %arg2[%c0_1, %c0_2] : memref<1x512xf32, #tpu.memory_space<vmem>>, vector<1x512xf32>
    %2 = vector.broadcast %1 : vector<1x512xf32> to vector<4x512xf32>
    %3 = arith.mulf %0, %2 : vector<4x512xf32>
    %c0_3 = arith.constant 0 : index
    %c0_4 = arith.constant 0 : index
    %4 = vector.load %arg3[%c0_3, %c0_4] : memref<1x512xf32, #tpu.memory_space<vmem>>, vector<1x512xf32>
    %5 = vector.broadcast %4 : vector<1x512xf32> to vector<4x512xf32>
    %6 = arith.addf %3, %5 : vector<4x512xf32>
    %c0_5 = arith.constant 0 : index
    %c0_6 = arith.constant 0 : index
    %7 = vector.load %arg4[%c0_5, %c0_6] : memref<4x512xf32, #tpu.memory_space<vmem>>, vector<4x512xf32>
    tpu.vector_store %arg4[%c0_5, %c0_6], %6 {strides = array<i32>} : memref<4x512xf32, #tpu.memory_space<vmem>>, vector<4x512xf32>,
    return
  }
  func.func @transform_0(%arg0: i32) -> (i32, i32) {
    %c0_i32 = arith.constant 0 : i32
    %c0_i32_0 = arith.constant 0 : i32
    return %arg0, %c0_i32 : i32, i32
  }
  func.func @transform_1(%arg0: i32) -> (i32, i32) {
    %c0_i32 = arith.constant 0 : i32
    %c0_i32_0 = arith.constant 0 : i32
    %c0_i32_1 = arith.constant 0 : i32
    return %c0_i32, %c0_i32_0 : i32, i32
  }
  func.func @transform_2(%arg0: i32) -> (i32, i32) {
    %c0_i32 = arith.constant 0 : i32
    %c0_i32_0 = arith.constant 0 : i32
    %c0_i32_1 = arith.constant 0 : i32
    return %c0_i32, %c0_i32_0 : i32, i32
  }
  func.func @transform_3(%arg0: i32) -> (i32, i32) {
    %c0_i32 = arith.constant 0 : i32
    %c0_i32_0 = arith.constant 0 : i32
    return %arg0, %c0_i32 : i32, i32
  }
}

</mosaic_0001>

<bundles_post_ra>
// kernel: tpu_custom_call.1
= control target key start
LH: loop header
LB: loop body
LE: loop exit
PB: predicated region body
PF: predicated region fallthrough
CT: control target
= control target key end

     0   :  { %8 = vsyncpa [#allocation3], 0  ;;  %s244_s0 = inlined_call_operand.hbm [shape: f32[4,512], index: 0, kind: input, shape index: {}]   ;;  %s245_s1 = inlined_call_operand.hbm [shape: f32[1,512], index: 1, kind: input, shape index: {}]   ;;  %s246_s2 = inlined_call_operand.vmem [shape: f32[1,512], index: 2, kind: input, shape index: {}]   ;;  %s247_s3 = inlined_call_operand.hbm [shape: f32[4,512], index: 3, kind: output, shape index: {}]  }
   0x1   :  { %9 = vsyncpa [#allocation6], 0 }
   0x2   :  { %10 = vsyncpa [#allocation4], 0  ;;  %s182_s12 = smov [#allocation2]   ;;  %s183_s14 = smov [#allocation5]  }
   0x3   :  { %s17_s13 = sshll.u32 %s182_s12, 4  ;;  %s27_s15 = sshll.u32 %s183_s14, 4  ;;  %s18_s13 = int_to_ptr.vmem [resolvable:$true] %s17_s13  ;;  %s28_s15 = int_to_ptr.vmem [resolvable:$true] %s27_s15 }
   0x4   :  { %s110_s18 = scalar_lea.hbm %s244_s0, 256 }
   0x5   :  { %p111_p0 = scmp.ne.s32.totalorder %s244_s0, %s110_s18  ;;  %p114_p1 = scmp.lt.u32.totalorder %s110_s18, %s244_s0 }
   0x7   :  { %p116_p2 = pnand %p114_p1, %p111_p0 }
   0x9   :  { %119 = shalt.err (!%p116_p2)
}
   0xa   :  { %s120_s23 = scalar_lea.vmem %s18_s13, 256  ;;  %p125_p4 = scmp.lt.s32.totalorder %s18_s13, %s18_s13 }
   0xb   :  { %p121_p3 = scmp.ne.s32.totalorder %s18_s13, %s120_s23  ;;  %p126_p5 = scmp.lt.s32.totalorder %s120_s23, %s120_s23 }
   0xd   :  { %p127_p6 = por %p126_p5, %p125_p4 }
   0xf   :  { %p128_p7 = pnand %p127_p6, %p121_p3 }
  0x11   :  { %131 = shalt.err (!%p128_p7)
}
  0x12   :  { %20 = dma.hbm_to_vmem [thread:$0]  %s244_s0, 256, %s18_s13, [#allocation3]  }
  0x13   :  { %s132_s28 = scalar_lea.hbm %s245_s1, 64 }
  0x14   :  { %p133_p8 = scmp.ne.s32.totalorder %s245_s1, %s132_s28  ;;  %p136_p9 = scmp.lt.u32.totalorder %s132_s28, %s245_s1 }
  0x16   :  { %p138_p10 = pnand %p136_p9, %p133_p8 }
  0x18   :  { %141 = shalt.err (!%p138_p10)
}
  0x19   :  { %s142_s6 = scalar_lea.vmem %s28_s15, 64  ;;  %p147_p12 = scmp.lt.s32.totalorder %s28_s15, %s28_s15 }
  0x1a   :  { %p143_p11 = scmp.ne.s32.totalorder %s28_s15, %s142_s6  ;;  %p148_p13 = scmp.lt.s32.totalorder %s142_s6, %s142_s6 }
  0x1c   :  { %p149_p0 = por %p148_p13, %p147_p12 }
  0x1e   :  { %p150_p1 = pnand %p149_p0, %p143_p11 }
  0x20   :  { %153 = shalt.err (!%p150_p1)
}
  0x21   :  { %30 = dma.hbm_to_vmem [thread:$0]  %s245_s1, 64, %s28_s15, [#allocation6]  }
  0x22   :  { %176 = dma.done.wait [#allocation3], 256  }
  0x23   :  { %177 = vsyncadd [#allocation3], 4294967040 }
  0x24   :  { %178 = dma.done.wait [#allocation6], 64  }
  0x25   :  { %179 = vsyncadd [#allocation6], 4294967232  ;;  %v43_v0 = vlaneseq  ;;  %v41_v6 = vld [vmem:[#allocation5] sm:$0xf]  ;;  %v65_v7 = vld [vmem:[%s246_s2] sm:$0xf] }
  0x26   :  { %v39_v12 = vld [vmem:[#allocation2] sm:$0xff]  ;;  %v40_v19 = vld [vmem:[#allocation2 + $0x8] sm:$0xff]  ;;  %s184_s1 = smov [#allocation7]  }
  0x27   :  { %v44_v1 = vshrl.u32 %v43_v0, 7  ;;  %s97_s10 = sshll.u32 %s184_s1, 4  ;;  %s98_s10 = int_to_ptr.vmem [resolvable:$true] %s97_s10 }
  0x28   :  { %s154_s2 = scalar_lea.vmem %s98_s10, 256  ;;  %p159_p3 = scmp.lt.s32.totalorder %s98_s10, %s98_s10 }
  0x29   :  { %v45_v2 = vsub.s32 0, %v44_v1  ;;  %v49_v3 = vsub.s32 1, %v44_v1  ;;  %v53_v4 = vsub.s32 2, %v44_v1  ;;  %v57_v5 = vsub.s32 3, %v44_v1  ;;  %p155_p2 = scmp.ne.s32.totalorder %s98_s10, %s154_s2  ;;  %p160_p4 = scmp.lt.s32.totalorder %s154_s2, %s154_s2 }
  0x2b   :  { %v46_v8 = vrot.slane %v41_v6, %v45_v2  ;;  %v50_v9 = vrot.slane %v41_v6, %v49_v3  ;;  %v70_v10 = vrot.slane %v65_v7, %v45_v2  ;;  %v74_v11 = vrot.slane %v65_v7, %v49_v3  ;;  %p161_p5 = por %p160_p4, %p159_p3 }
  0x2c   :  { %v54_v13 = vrot.slane %v41_v6, %v53_v4  ;;  %v58_v14 = vrot.slane %v41_v6, %v57_v5  ;;  %v78_v15 = vrot.slane %v65_v7, %v53_v4  ;;  %v82_v16 = vrot.slane %v65_v7, %v57_v5 }
  0x2d   :  { %v59_v17 = vcombine.low %v46_v8, %v50_v9  ;;  %v83_v18 = vcombine.low %v70_v10, %v74_v11  ;;  %p162_p6 = pnand %p161_p5, %p155_p2 }
  0x2e   :  { %v60_v20 = vcombine.low %v54_v13, %v58_v14  ;;  %v84_v21 = vcombine.low %v78_v15, %v82_v16 }
  0x2f   :  { %v63_v22 = vmul.f32 %v59_v17, %v39_v12 }
  0x30   :  { %v64_v23 = vmul.f32 %v60_v20, %v40_v19 }
  0x31   :  { %v87_v24 = vadd.f32 %v83_v18, %v63_v22 }
  0x32   :  { %v88_v25 = vadd.f32 %v84_v21, %v64_v23 }
  0x33   :  { %89 = vst [vmem:[#allocation7] sm:$0xff] %v87_v24 }
  0x34   :  { %90 = vst [vmem:[#allocation7 + $0x8] sm:$0xff] %v88_v25 }
  0x35   :  { %165 = shalt.err (!%p162_p6)
}
  0x36   :  { %s166_s13 = scalar_lea.hbm %s247_s3, 256 }
  0x37   :  { %p167_p7 = scmp.ne.s32.totalorder %s247_s3, %s166_s13  ;;  %p170_p8 = scmp.lt.u32.totalorder %s166_s13, %s247_s3 }
  0x39   :  { %p172_p9 = pnand %p170_p8, %p167_p7 }
  0x3b   :  { %175 = shalt.err (!%p172_p9)
}
  0x3c   :  { %100 = dma.vmem_to_hbm [thread:$0]  %s98_s10, 256, %s247_s3, [#allocation4]  }
  0x3d   :  { %180 = dma.done.wait [#allocation4], 256  }
  0x3e   :  { %181 = vsyncadd [#allocation4], 4294967040 }
  0x3f   :  { %104 = vsyncpa [#allocation3], 1 }
  0x40   :  { %105 = vsyncpa [#allocation6], 1 }
  0x41   :  { %106 = vsyncpa [#allocation4], 1 }

</bundles_post_ra>
